<compile_context>
chip_gen: v6e
topology: v6e:2x2x1
jax: 0.10.0
libtpu: 0.0.40
codegen_flags: <defaults>
</compile_context>

<pallas_src>
import functools

import jax
import jax.numpy as jnp
from jax.experimental import pallas as pl
from jax.experimental.pallas import tpu as pltpu


HG_HIDDEN = 16        # hourglass stand-in hidden width
FLOW_CH = 2           # hourglass output channels ("flow")
CNN3D_FEAT = 32       # 3D-CNN stand-in feature width
NUM_CLASSES = 10
HG_DOWNSAMPLE = 4     # hourglass stand-in outputs at /4 resolution


# ---------------------------------------------------------------------------
# Fused Pallas kernel: pooled pairs (6, TP) -> running pooled feats -> logits
# ---------------------------------------------------------------------------

def _flowstream_fused_kernel(x_ref, w1_ref, b1_ref, w2_ref, b2_ref,
                             w3_ref, b3_ref, fcw_ref, fcb_ref,
                             o_ref, acc_ref, *, p_true, tile_p, needs_mask):
    """Grid = (batch [parallel], position-tile [arbitrary / reduction]).

    Channels on sublanes, positions on lanes (lane-dense):
        h1   = relu(W1ᵀ @ x + b1)        (16, TP)
        flow = W2ᵀ @ h1 + b2             (2,  TP)   <- hourglass stand-in output
        feat = relu(W3ᵀ @ flow + b3)     (32, TP)   <- 3D-CNN stand-in features
        acc += Σ_lanes feat              (32, 1)    running global-avg-pool sum
    On the last position tile:
        logits = FCᵀ @ (acc / P) + fc_b  (10, 1)
    """
    p_idx = pl.program_id(1)

    @pl.when(p_idx == 0)
    def _():
        acc_ref[...] = jnp.zeros_like(acc_ref)

    x = x_ref[0]                                                        # (6, TP)
    h1 = jnp.dot(w1_ref[...], x, preferred_element_type=jnp.float32)
    h1 = jnp.maximum(h1 + b1_ref[...], 0.0)                             # (16, TP)
    flow = jnp.dot(w2_ref[...], h1,
                   preferred_element_type=jnp.float32) + b2_ref[...]    # (2, TP)
    feat = jnp.dot(w3_ref[...], flow, preferred_element_type=jnp.float32)
    feat = jnp.maximum(feat + b3_ref[...], 0.0)                         # (32, TP)

    if needs_mask:  # zero-padded positions must not bias the global average
        lane = jax.lax.broadcasted_iota(jnp.int32, (1, tile_p), 1)
        feat = jnp.where(lane + p_idx * tile_p < p_true, feat, 0.0)

    acc_ref[...] += jnp.sum(feat, axis=1, keepdims=True)                # (32, 1)

    @pl.when(p_idx == pl.num_programs(1) - 1)
    def _():
        pooled = acc_ref[...] * (1.0 / p_true)                          # (32, 1)
        logits = jnp.dot(fcw_ref[...], pooled,
                         preferred_element_type=jnp.float32) + fcb_ref[...]
        o_ref[0] = logits.astype(o_ref.dtype)                           # (10, 1)


# ---------------------------------------------------------------------------
# Wrappers
# ---------------------------------------------------------------------------

def _choose_position_tile(p, max_tp):
    """Full P if it fits (single grid step); else the largest multiple-of-128
    divisor of P <= max_tp; else pad P up to a multiple of the capped tile."""
    if p <= max_tp:
        return p, p
    cap = max(128, (max_tp // 128) * 128)
    for cand in range(cap, 0, -128):
        if p % cand == 0:
            return cand, p
    return cap, ((p + cap - 1) // cap) * cap


def _fused_flow_classifier(x6, params, p_true, tile_p):
    """x6: (B, 6, P_pad) channels-first, positions last -> logits (B, 10)."""
    bsz, _, p_pad = x6.shape
    np_tiles = p_pad // tile_p
    kernel = functools.partial(
        _flowstream_fused_kernel,
        p_true=p_true, tile_p=tile_p, needs_mask=(p_pad != p_true))
    out = pl.pallas_call(
        kernel,
        out_shape=jax.ShapeDtypeStruct((bsz, NUM_CLASSES, 1), jnp.float32),
        grid=(bsz, np_tiles),
        in_specs=[
            pl.BlockSpec((1, 6, tile_p), lambda b, p: (b, 0, p)),
            pl.BlockSpec((HG_HIDDEN, 6), lambda b, p: (0, 0)),
            pl.BlockSpec((HG_HIDDEN, 1), lambda b, p: (0, 0)),
            pl.BlockSpec((FLOW_CH, HG_HIDDEN), lambda b, p: (0, 0)),
            pl.BlockSpec((FLOW_CH, 1), lambda b, p: (0, 0)),
            pl.BlockSpec((CNN3D_FEAT, FLOW_CH), lambda b, p: (0, 0)),
            pl.BlockSpec((CNN3D_FEAT, 1), lambda b, p: (0, 0)),
            pl.BlockSpec((NUM_CLASSES, CNN3D_FEAT), lambda b, p: (0, 0)),
            pl.BlockSpec((NUM_CLASSES, 1), lambda b, p: (0, 0)),
        ],
        out_specs=pl.BlockSpec((1, NUM_CLASSES, 1), lambda b, p: (b, 0, 0)),
        scratch_shapes=[pltpu.VMEM((CNN3D_FEAT, 1), jnp.float32)],
        compiler_params=pltpu.CompilerParams(
            dimension_semantics=("parallel", "arbitrary")),
    )(x6,
      params["hg_w1t"], params["hg_b1"], params["hg_w2t"], params["hg_b2"],
      params["c3_wt"], params["c3_b"], params["fc_wt"], params["fc_b"])
    return out[:, :, 0]


def flowstream_forward(params, x, inp_res, max_position_tile=8192):
    # x: (B, 3, T, H, W) float32 (PyTorch NCTHW layout)
    B, C, T, H, W = x.shape
    assert C == 3 and T >= 2
    assert H % HG_DOWNSAMPLE == 0 and W % HG_DOWNSAMPLE == 0

    # Frame-pair channel stacking == x[:, :, t:t+2].permute(0,2,1,3,4).reshape(B,6,H,W),
    # kept channels-first so no transpose is ever needed downstream.
    pairs = jnp.concatenate([x[:, :, :-1], x[:, :, 1:]], axis=1)        # (B, 6, T-1, H, W)

    # Hourglass stand-in front end: /4 average pool.  Left to XLA (it fuses
    # slice+concat+pool); only the 16x-smaller pooled tensor is materialized.
    h, w = H // HG_DOWNSAMPLE, W // HG_DOWNSAMPLE
    pooled = pairs.reshape(
        B, 6, T - 1, h, HG_DOWNSAMPLE, w, HG_DOWNSAMPLE).mean(axis=(4, 6))

    # Nearest-resize branch (matches the torch `if` guard), folded into the fused
    # chain: identity / integer upsample are absorbed exactly (pointwise conv +
    # uniform replication + global average commute); integer downsample is an
    # exact strided subsample because the stand-in flow head is pointwise.
    if inp_res != h or inp_res != w:
        if inp_res > h and inp_res % h == 0 and inp_res % w == 0:
            pass  # replication upsample: no-op for the fused pooled path (exact)
        elif h % inp_res == 0 and w % inp_res == 0:
            pooled = pooled[..., ::h // inp_res, ::w // inp_res]
            h = w = inp_res
        else:
            raise NotImplementedError  # TODO(synk): non-integer nearest scale factor

    P = (T - 1) * h * w
    x6 = pooled.reshape(B, 6, P)                                        # positions on lanes

    tile_p, p_pad = _choose_position_tile(P, max_position_tile)
    if p_pad != P:
        # Only the small pooled 6-channel tensor is padded (never the big activations);
        # padded positions are masked out of the running sum inside the kernel.
        x6 = jnp.pad(x6, ((0, 0), (0, 0), (0, p_pad - P)))

    return _fused_flow_classifier(x6, params, P, tile_p)


# ---------------------------------------------------------------------------
# Params + pure-JAX reference (mirrors the unfused pipeline, for validation)
# ---------------------------------------------------------------------------

def init_params(key):
    kw = jax.random.split(key, 8)
    s, sb = 0.5, 0.1
    return {
        # weights stored transposed (C_out, C_in); biases as (C_out, 1) columns
        "hg_w1t": s * jax.random.normal(kw[0], (HG_HIDDEN, 6), jnp.float32),
        "hg_b1": sb * jax.random.normal(kw[1], (HG_HIDDEN, 1), jnp.float32),
        "hg_w2t": s * jax.random.normal(kw[2], (FLOW_CH, HG_HIDDEN), jnp.float32),
        "hg_b2": sb * jax.random.normal(kw[3], (FLOW_CH, 1), jnp.float32),
        "c3_wt": s * jax.random.normal(kw[4], (CNN3D_FEAT, FLOW_CH), jnp.float32),
        "c3_b": sb * jax.random.normal(kw[5], (CNN3D_FEAT, 1), jnp.float32),
        "fc_wt": s * jax.random.normal(kw[6], (NUM_CLASSES, CNN3D_FEAT), jnp.float32),
        "fc_b": sb * jax.random.normal(kw[7], (NUM_CLASSES, 1), jnp.float32),
    }


def flowstream_reference(params, x, inp_res):
    B, C, T, H, W = x.shape
    pairs = jnp.concatenate([x[:, :, :-1], x[:, :, 1:]], axis=1)
    h, w = H // HG_DOWNSAMPLE, W // HG_DOWNSAMPLE
    pooled = pairs.reshape(
        B, 6, T - 1, h, HG_DOWNSAMPLE, w, HG_DOWNSAMPLE).mean(axis=(4, 6))
    rows = jnp.transpose(pooled, (0, 2, 3, 4, 1))                       # (B, T-1, h, w, 6)
    h1 = jnp.maximum(rows @ params["hg_w1t"].T + params["hg_b1"][:, 0], 0.0)
    flow = h1 @ params["hg_w2t"].T + params["hg_b2"][:, 0]              # (B, T-1, h, w, 2)
    if inp_res != h:
        if inp_res > h and inp_res % h == 0:
            f = inp_res // h
            flow = jnp.repeat(jnp.repeat(flow, f, axis=2), f, axis=3)
        elif h % inp_res == 0:
            f = h // inp_res
            flow = flow[:, :, ::f, ::f]
        else:
            raise NotImplementedError
    feat = jnp.maximum(flow @ params["c3_wt"].T + params["c3_b"][:, 0], 0.0)
    pooled_feat = feat.mean(axis=(1, 2, 3))                             # (B, 32)
    return pooled_feat @ params["fc_wt"].T + params["fc_b"][:, 0]       # (B, 10)


if __name__ == "__main__":
    key = jax.random.PRNGKey(0)
    k_x, k_p = jax.random.split(key)

    B, T, H, W = 2, 4, 32, 32
    inp_res = H // HG_DOWNSAMPLE      # stand-in hourglass outputs /4 resolution
    x = jax.random.normal(k_x, (B, 3, T, H, W), jnp.float32)
    params = init_params(k_p)

    fwd = jax.jit(flowstream_forward,
                  static_argnames=("inp_res", "max_position_tile"))

    # Single-position-tile path (entire per-batch reduction in one grid step).
    out = jax.block_until_ready(
        fwd(params, x, inp_res=inp_res, max_position_tile=8192))
    # Multi-tile + ragged-mask path (forces TP=128: P=192 padded to 256).
    out_tiled = jax.block_until_ready(
        fwd(params, x, inp_res=inp_res, max_position_tile=128))

    ref = jax.block_until_ready(flowstream_reference(params, x, inp_res))

    assert out.shape == (B, NUM_CLASSES)
    assert jnp.all(jnp.isfinite(out))
    assert jnp.allclose(out, ref, rtol=5e-2, atol=1e-2)
    assert jnp.allclose(out_tiled, ref, rtol=5e-2, atol=1e-2)
    print("KERNEL_OK")
</pallas_src>

<mosaic_0001>
module attributes {stable_mosaic.version = 11 : i64} {
  func.func @_flowstream_fused_kernel(%arg0: i32, %arg1: i32, %arg2: memref<1x6x192xf32, #tpu.memory_space<vmem>>, %arg3: memref<16x6xf32, #tpu.memory_space<vmem>>, %arg4: memref<16x1xf32, #tpu.memory_space<vmem>>, %arg5: memref<2x16xf32, #tpu.memory_space<vmem>>, %arg6: memref<2x1xf32, #tpu.memory_space<vmem>>, %arg7: memref<32x2xf32, #tpu.memory_space<vmem>>, %arg8: memref<32x1xf32, #tpu.memory_space<vmem>>, %arg9: memref<10x32xf32, #tpu.memory_space<vmem>>, %arg10: memref<10x1xf32, #tpu.memory_space<vmem>>, %arg11: memref<1x10x1xf32, #tpu.memory_space<vmem>>, %arg12: memref<32x1xf32, #tpu.memory_space<vmem>>) attributes {dimension_semantics = [#tpu.dimension_semantics<parallel>, #tpu.dimension_semantics<arbitrary>], iteration_bounds = array<i64: 2, 1>, scalar_prefetch = 0 : i64, scratch_operands = 1 : i64, tpu.core_type = #tpu.core_type<tc>, window_params = [{transform_indices = @transform_0, window_bounds = array<i64: 1, 6, 192>}, {pipeline_mode = #tpu.pipeline_mode<synchronous>, transform_indices = @transform_1, window_bounds = array<i64: 16, 6>}, {pipeline_mode = #tpu.pipeline_mode<synchronous>, transform_indices = @transform_2, window_bounds = array<i64: 16, 1>}, {pipeline_mode = #tpu.pipeline_mode<synchronous>, transform_indices = @transform_3, window_bounds = array<i64: 2, 16>}, {pipeline_mode = #tpu.pipeline_mode<synchronous>, transform_indices = @transform_4, window_bounds = array<i64: 2, 1>}, {pipeline_mode = #tpu.pipeline_mode<synchronous>, transform_indices = @transform_5, window_bounds = array<i64: 32, 2>}, {pipeline_mode = #tpu.pipeline_mode<synchronous>, transform_indices = @transform_6, window_bounds = array<i64: 32, 1>}, {pipeline_mode = #tpu.pipeline_mode<synchronous>, transform_indices = @transform_7, window_bounds = array<i64: 10, 32>}, {pipeline_mode = #tpu.pipeline_mode<synchronous>, transform_indices = @transform_8, window_bounds = array<i64: 10, 1>}, {transform_indices = @transform_9, window_bounds = array<i64: 1, 10, 1>}]} {
    %c0_i32 = arith.constant 0 : i32
    %0 = arith.cmpi eq, %arg1, %c0_i32 : i32
    %1 = arith.extui %0 : i1 to i32
    %c0_i32_0 = arith.constant 0 : i32
    %2 = arith.cmpi ne, %1, %c0_i32_0 : i32
    scf.if %2 {
      %cst_26 = arith.constant 0.000000e+00 : f32
      %32 = vector.broadcast %cst_26 : f32 to vector<32x1xf32>
      %c0_27 = arith.constant 0 : index
      %c0_28 = arith.constant 0 : index
      %33 = vector.load %arg12[%c0_27, %c0_28] : memref<32x1xf32, #tpu.memory_space<vmem>>, vector<32x1xf32>
      tpu.vector_store %arg12[%c0_27, %c0_28], %32 {strides = array<i32>} : memref<32x1xf32, #tpu.memory_space<vmem>>, vector<32x1xf32>,
    } else {
    }
    %c0 = arith.constant 0 : index
    %c0_1 = arith.constant 0 : index
    %c0_2 = arith.constant 0 : index
    %3 = vector.load %arg2[%c0, %c0_1, %c0_2] : memref<1x6x192xf32, #tpu.memory_space<vmem>>, vector<1x6x192xf32>
    %4 = vector.shape_cast %3 : vector<1x6x192xf32> to vector<6x192xf32>
    %c0_3 = arith.constant 0 : index
    %c0_4 = arith.constant 0 : index
    %5 = vector.load %arg3[%c0_3, %c0_4] : memref<16x6xf32, #tpu.memory_space<vmem>>, vector<16x6xf32>
    %cst = arith.constant dense<0.000000e+00> : vector<16x192xf32>
    %6 = tpu.matmul %5, %4, %cst {dimension_numbers = #tpu.dot_dimension_numbers<[1], [0], [0], [1], [0, 0, 1, 1], [], []>} : vector<16x6xf32>, vector<6x192xf32>, vector<16x192xf32> -> vector<16x192xf32>
    %c0_5 = arith.constant 0 : index
    %c0_6 = arith.constant 0 : index
    %7 = vector.load %arg4[%c0_5, %c0_6] : memref<16x1xf32, #tpu.memory_space<vmem>>, vector<16x1xf32>
    %8 = vector.broadcast %7 : vector<16x1xf32> to vector<16x192xf32>
    %9 = arith.addf %6, %8 : vector<16x192xf32>
    %cst_7 = arith.constant 0.000000e+00 : f32
    %10 = vector.broadcast %cst_7 : f32 to vector<16x192xf32>
    %11 = arith.maximumf %9, %10 : vector<16x192xf32>
    %c0_8 = arith.constant 0 : index
    %c0_9 = arith.constant 0 : index
    %12 = vector.load %arg5[%c0_8, %c0_9] : memref<2x16xf32, #tpu.memory_space<vmem>>, vector<2x16xf32>
    %cst_10 = arith.constant dense<0.000000e+00> : vector<2x192xf32>
    %13 = tpu.matmul %12, %11, %cst_10 {dimension_numbers = #tpu.dot_dimension_numbers<[1], [0], [0], [1], [0, 0, 1, 1], [], []>} : vector<2x16xf32>, vector<16x192xf32>, vector<2x192xf32> -> vector<2x192xf32>
    %c0_11 = arith.constant 0 : index
    %c0_12 = arith.constant 0 : index
    %14 = vector.load %arg6[%c0_11, %c0_12] : memref<2x1xf32, #tpu.memory_space<vmem>>, vector<2x1xf32>
    %15 = vector.broadcast %14 : vector<2x1xf32> to vector<2x192xf32>
    %16 = arith.addf %13, %15 : vector<2x192xf32>
    %c0_13 = arith.constant 0 : index
    %c0_14 = arith.constant 0 : index
    %17 = vector.load %arg7[%c0_13, %c0_14] : memref<32x2xf32, #tpu.memory_space<vmem>>, vector<32x2xf32>
    %cst_15 = arith.constant dense<0.000000e+00> : vector<32x192xf32>
    %18 = tpu.matmul %17, %16, %cst_15 {dimension_numbers = #tpu.dot_dimension_numbers<[1], [0], [0], [1], [0, 0, 1, 1], [], []>} : vector<32x2xf32>, vector<2x192xf32>, vector<32x192xf32> -> vector<32x192xf32>
    %c0_16 = arith.constant 0 : index
    %c0_17 = arith.constant 0 : index
    %19 = vector.load %arg8[%c0_16, %c0_17] : memref<32x1xf32, #tpu.memory_space<vmem>>, vector<32x1xf32>
    %20 = vector.broadcast %19 : vector<32x1xf32> to vector<32x192xf32>
    %21 = arith.addf %18, %20 : vector<32x192xf32>
    %cst_18 = arith.constant 0.000000e+00 : f32
    %22 = vector.broadcast %cst_18 : f32 to vector<32x192xf32>
    %23 = arith.maximumf %21, %22 : vector<32x192xf32>
    %c0_19 = arith.constant 0 : index
    %c0_20 = arith.constant 0 : index
    %24 = vector.load %arg12[%c0_19, %c0_20] : memref<32x1xf32, #tpu.memory_space<vmem>>, vector<32x1xf32>
    %cst_21 = arith.constant dense<0.000000e+00> : vector<32xf32>
    %25 = vector.multi_reduction <add>, %23, %cst_21 [1] : vector<32x192xf32> to vector<32xf32>
    %26 = vector.shape_cast %25 : vector<32xf32> to vector<32x1xf32>
    %27 = arith.addf %24, %26 : vector<32x1xf32>
    %c0_22 = arith.constant 0 : index
    %c0_23 = arith.constant 0 : index
    %28 = vector.load %arg12[%c0_22, %c0_23] : memref<32x1xf32, #tpu.memory_space<vmem>>, vector<32x1xf32>
    tpu.vector_store %arg12[%c0_22, %c0_23], %27 {strides = array<i32>} : memref<32x1xf32, #tpu.memory_space<vmem>>, vector<32x1xf32>,
    %c0_i32_24 = arith.constant 0 : i32
    %29 = arith.cmpi eq, %arg1, %c0_i32_24 : i32
    %30 = arith.extui %29 : i1 to i32
    %c0_i32_25 = arith.constant 0 : i32
    %31 = arith.cmpi ne, %30, %c0_i32_25 : i32
    scf.if %31 {
      %c0_26 = arith.constant 0 : index
      %c0_27 = arith.constant 0 : index
      %32 = vector.load %arg12[%c0_26, %c0_27] : memref<32x1xf32, #tpu.memory_space<vmem>>, vector<32x1xf32>
      %cst_28 = arith.constant 0.00520833349 : f32
      %33 = vector.broadcast %cst_28 : f32 to vector<32x1xf32>
      %34 = arith.mulf %32, %33 : vector<32x1xf32>
      %c0_29 = arith.constant 0 : index
      %c0_30 = arith.constant 0 : index
      %35 = vector.load %arg9[%c0_29, %c0_30] : memref<10x32xf32, #tpu.memory_space<vmem>>, vector<10x32xf32>
      %cst_31 = arith.constant dense<0.000000e+00> : vector<10x1xf32>
      %36 = tpu.matmul %35, %34, %cst_31 {dimension_numbers = #tpu.dot_dimension_numbers<[1], [0], [0], [1], [0, 0, 1, 1], [], []>} : vector<10x32xf32>, vector<32x1xf32>, vector<10x1xf32> -> vector<10x1xf32>
      %c0_32 = arith.constant 0 : index
      %c0_33 = arith.constant 0 : index
      %37 = vector.load %arg10[%c0_32, %c0_33] : memref<10x1xf32, #tpu.memory_space<vmem>>, vector<10x1xf32>
      %38 = arith.addf %36, %37 : vector<10x1xf32>
      %c0_34 = arith.constant 0 : index
      %c0_35 = arith.constant 0 : index
      %c0_36 = arith.constant 0 : index
      %39 = vector.load %arg11[%c0_34, %c0_35, %c0_36] : memref<1x10x1xf32, #tpu.memory_space<vmem>>, vector<1x10x1xf32>
      %40 = vector.shape_cast %39 : vector<1x10x1xf32> to vector<10x1xf32>
      %41 = vector.shape_cast %38 : vector<10x1xf32> to vector<1x10x1xf32>
      tpu.vector_store %arg11[%c0_34, %c0_35, %c0_36], %41 {strides = array<i32>} : memref<1x10x1xf32, #tpu.memory_space<vmem>>, vector<1x10x1xf32>,
    } else {
    }
    return
  }
  func.func @transform_0(%arg0: i32, %arg1: i32) -> (i32, i32, i32) {
    %c0_i32 = arith.constant 0 : i32
    %c0_i32_0 = arith.constant 0 : i32
    return %arg0, %c0_i32, %arg1 : i32, i32, i32
  }
  func.func @transform_1(%arg0: i32, %arg1: i32) -> (i32, i32) {
    %c0_i32 = arith.constant 0 : i32
    %c0_i32_0 = arith.constant 0 : i32
    %c0_i32_1 = arith.constant 0 : i32
    return %c0_i32, %c0_i32_0 : i32, i32
  }
  func.func @transform_2(%arg0: i32, %arg1: i32) -> (i32, i32) {
    %c0_i32 = arith.constant 0 : i32
    %c0_i32_0 = arith.constant 0 : i32
    %c0_i32_1 = arith.constant 0 : i32
    return %c0_i32, %c0_i32_0 : i32, i32
  }
  func.func @transform_3(%arg0: i32, %arg1: i32) -> (i32, i32) {
    %c0_i32 = arith.constant 0 : i32
    %c0_i32_0 = arith.constant 0 : i32
    %c0_i32_1 = arith.constant 0 : i32
    return %c0_i32, %c0_i32_0 : i32, i32
  }
  func.func @transform_4(%arg0: i32, %arg1: i32) -> (i32, i32) {
    %c0_i32 = arith.constant 0 : i32
    %c0_i32_0 = arith.constant 0 : i32
    %c0_i32_1 = arith.constant 0 : i32
    return %c0_i32, %c0_i32_0 : i32, i32
  }
  func.func @transform_5(%arg0: i32, %arg1: i32) -> (i32, i32) {
    %c0_i32 = arith.constant 0 : i32
    %c0_i32_0 = arith.constant 0 : i32
    %c0_i32_1 = arith.constant 0 : i32
    return %c0_i32, %c0_i32_0 : i32, i32
  }
  func.func @transform_6(%arg0: i32, %arg1: i32) -> (i32, i32) {
    %c0_i32 = arith.constant 0 : i32
    %c0_i32_0 = arith.constant 0 : i32
    %c0_i32_1 = arith.constant 0 : i32
    return %c0_i32, %c0_i32_0 : i32, i32
  }
  func.func @transform_7(%arg0: i32, %arg1: i32) -> (i32, i32) {
    %c0_i32 = arith.constant 0 : i32
    %c0_i32_0 = arith.constant 0 : i32
    %c0_i32_1 = arith.constant 0 : i32
    return %c0_i32, %c0_i32_0 : i32, i32
  }
  func.func @transform_8(%arg0: i32, %arg1: i32) -> (i32, i32) {
    %c0_i32 = arith.constant 0 : i32
    %c0_i32_0 = arith.constant 0 : i32
    %c0_i32_1 = arith.constant 0 : i32
    return %c0_i32, %c0_i32_0 : i32, i32
  }
  func.func @transform_9(%arg0: i32, %arg1: i32) -> (i32, i32, i32) {
    %c0_i32 = arith.constant 0 : i32
    %c0_i32_0 = arith.constant 0 : i32
    %c0_i32_1 = arith.constant 0 : i32
    return %arg0, %c0_i32, %c0_i32_0 : i32, i32, i32
  }
}

</mosaic_0001>

<bundles_post_ra>
// kernel: flowstream_forward.1
= control target key start
LH: loop header
LB: loop body
LE: loop exit
PB: predicated region body
PF: predicated region fallthrough
CT: control target
= control target key end

     0   :  { %s1054_s30 = smov 0   ;;  %s1056_s10 = smov 0   ;;  %s1170_s0 = inlined_call_operand.vmem [shape: f32[2,6,192], index: 0, kind: input, shape index: {}]   ;;  %s1171_s1 = inlined_call_operand.vmem [shape: f32[16,6], index: 1, kind: input, shape index: {}]   ;;  %s1172_s2 = inlined_call_operand.vmem [shape: f32[16,1], index: 2, kind: input, shape index: {}]   ;;  %s1173_s3 = inlined_call_operand.vmem [shape: f32[2,16], index: 3, kind: input, shape index: {}]   ;;  %s1174_s4 = inlined_call_operand.vmem [shape: f32[2,1], index: 4, kind: input, shape index: {}]   ;;  %s1175_s5 = inlined_call_operand.vmem [shape: f32[32,2], index: 5, kind: input, shape index: {}]   ;;  %s1176_s6 = inlined_call_operand.vmem [shape: f32[32,1], index: 6, kind: input, shape index: {}]   ;;  %s1177_s7 = inlined_call_operand.vmem [shape: f32[10,32], index: 7, kind: input, shape index: {}]   ;;  %s1178_s8 = inlined_call_operand.vmem [shape: f32[10,1], index: 8, kind: input, shape index: {}]   ;;  %s1179_s9 = inlined_call_operand.vmem [shape: f32[2,10,1], index: 9, kind: output, shape index: {}]  }
   0x1   :  { %s1058_s11 = smov 0  }
   0x2 LB: > { %s31_s12 = sadd.s32 1, %s996_s10  ;;  %p911_p0 = scmp.ge.s32.totalorder %s1000_s11, 1  ;;  %s1000_s11 = sphi %s1058_s11, %s19_s11   ;;  %s996_s10 = sphi %s1056_s10, %s1181_s10   ;;  %s992_s30 = sphi %s1054_s30, %s1180_s30  }
   0x3   : > { %p33_p1 = scmp.ge.s32.totalorder %s31_s12, 2  ;;  %p306_p2 = scmp.lt.s32.totalorder %s1000_s11, 3 }
   0x5   : > { %s1183_s12 = smov (%p33_p1, %s31_s12), 0  ;;  %p307_p3 = pnand %p911_p0, %p306_p2 }
   0x6   : > { %p347_p4 = scmp.lt.s32.totalorder (!%p307_p3), %s992_s30, 1 }
   0x7   : > { %310 = sbr.rel (%p307_p3) target bundleno = 994 (0x3e2), region = 56 }
   0xc   : > { %v1002_v0 = vmov 0.0   ;;  %v375_v1 = vld [vmem:[%s1172_s2 + $0x8] sm:$0xff]  ;;  %s1185_s30 = smov (!%p347_p4, %s992_s30), 1  ;;  %v1003_v2 = vmov 0   ;;  %vm393_vm0 = vcmask 1045504   ;;  %v374_v3 = vld [vmem:[%s1172_s2] sm:$0xff] }
   0xd   : > { %464 = vmatprep.mubr.f32.mxu0 %v1002_v0  ;;  %675 = vmatprep.mubr.f32.mxu1 %v1002_v0  ;;  %s931_s15 = sshll.u32 %s1185_s30, 4  ;;  %v372_v6 = vld [vmem:[%s1171_s1] sm:$0xff]  ;;  %vm386_vm1 = vcmask 48128   ;;  %v569_v7 = vld [vmem:[%s1176_s6 + $0x10] sm:$0xff]  ;;  %v373_v8 = vld [vmem:[%s1171_s1 + $0x8] sm:$0xff]  ;;  %vm488_vm2 = vcmask 130048  }
   0xe   : > { %976 = vset.pattern.permute.xlu0 %v1003_v2  ;;  %977 = vset.pattern.permute.xlu1 %v1003_v2  ;;  %s354_s20 = scalar_lea.vmem %s1170_s0, %s931_s15  ;;  %v567_v9 = vld [vmem:[%s1176_s6] sm:$0xff]  ;;  %v570_v11 = vld [vmem:[%s1176_s6 + $0x18] sm:$0xff]  ;;  %v568_v12 = vld [vmem:[%s1176_s6 + $0x8] sm:$0xff]  ;;  %vm604_vm3 = vcmask 1041408   ;;  %vm591_vm4 = vcmask 15360   ;;  %vm365_vm5 = vcmask 7168   ;;  %s360_s21 = scalar_lea.vmem %s1179_s9, %s931_s15 }
   0xf   : > { %383 = vperm.xlu0 %976, %v375_v1   ;;  %v371_v4 = vld [vmem:[%s354_s20 + $0x8] sm:$0x3f]  ;;  %v370_v5 = vld [vmem:[%s354_s20] sm:$0x3f]  ;;  %v565_v35 = vld [vmem:[%s1175_s5 + $0x10] sm:$0xff]  ;;  %368 = vst.msk [vmem:[#allocation2 + $0x10] sm:$0xff] %vm365_vm5, %v1002_v0 }
  0x10   : > { %916 = vmatprep.subr.msk.mxu0 %vm393_vm0, %v371_v4  ;;  %v482_v10 = vld [vmem:[%s1174_s4] sm:$0x3]  ;;  %v564_v34 = vld [vmem:[%s1175_s5 + $0x8] sm:$0xff]  ;;  %v566_v36 = vld [vmem:[%s1175_s5 + $0x18] sm:$0xff]  ;;  %366 = vst.msk [vmem:[#allocation2] sm:$0xff] %vm365_vm5, %v1002_v0  ;;  %vm712_vm6 = vcmask 523264  }
  0x11   : > { %917 = vmatpush1.msk.msra.mxu0 %vm393_vm0, %v370_v5  ;;  %485 = vperm.xlu1 %977, %v482_v10   ;;  %v481_v27 = vld [vmem:[%s1173_s3] sm:$0x3]  ;;  %367 = vst.msk [vmem:[#allocation2 + $0x8] sm:$0xff] %vm365_vm5, %v1002_v0  ;;  %369 = vst.msk [vmem:[#allocation2 + $0x18] sm:$0xff] %vm365_vm5, %v1002_v0  ;;  %vm753_vm7 = vcmask 261120   ;;  %vm836_vm8 = vcmask 1024  }
  0x12   : > { %918 = vmatmul.mubr.msk.f32.vlgmr.msra.gmra.mxu0 %vm386_vm1, %v372_v6  ;;  %v563_v33 = vld [vmem:[%s1175_s5] sm:$0xff] }
  0x13   : > { %378 = vperm.xlu0 %976, %v374_v3   ;;  %470 = vmatprep.mubr.f32.mxu0 %v1002_v0 }
  0x15   : > { %588 = vperm.xlu1 %977, %v570_v11  }
  0x16   : > { %919 = vmatmul.mubr.msk.f32.gmra.mxu0 %vm386_vm1, %v373_v8  ;;  %v710_v10 = vld [vmem:[#allocation2 + $0x10] sm:$0xff] }
  0x17   : > { %583 = vperm.xlu0 %976, %v569_v7   ;;  %556 = vmatprep.mubr.f32.mxu0 %v1002_v0 }
  0x19   : > { %578 = vperm.xlu1 %977, %v568_v12  }
  0x1b   : > { %573 = vperm.xlu0 %976, %v567_v9   ;;  %v749_v9 = vld [vmem:[%s1177_s7] sm:$0xff] }
  0x8a   : > { %v384_v13 = vpop.permute.xlu0 %383 }
  0x8c   : > { %v486_v29 = vpop.permute.xlu1 %485 }
  0x8e   : > { %v379_v17 = vpop.permute.xlu0 %378 }
  0x90   : > { %v589_v38 = vpop.permute.xlu1 %588 }
  0x92   : > { %v584_v41 = vpop.permute.xlu0 %583 }
  0x94   : > { %v579_v43 = vpop.permute.xlu1 %578 }
  0x96   : > { %v574_v49 = vpop.permute.xlu0 %573 }
  0xd2   : > { %v466_v14 = vpop.f32.mrf.mxu0 }
  0xd3   : > { %v467_v22 = vadd.f32 %v466_v14, %v379_v17  ;;  %v709_v14 = vld [vmem:[#allocation2 + $0x8] sm:$0xff] }
  0xd4   : > { %v468_v15 = vpop.f32.mrf.mxu0 }
  0xd5   : > { %v469_v20 = vadd.f32 %v468_v15, %v379_v17  ;;  %v477_v26 = vmax.f32 %v467_v22, 0.0 }
  0xd6   : > { %v472_v16 = vpop.f32.mrf.mxu0 }
  0xd7   : > { %v473_v18 = vadd.f32 %v472_v16, %v384_v13  ;;  %v478_v25 = vmax.f32 %v469_v20, 0.0 }
  0xd8   : > { %v474_v19 = vpop.f32.mrf.mxu0 }
  0xd9   : > { %v475_v21 = vadd.f32 %v474_v19, %v384_v13  ;;  %v479_v24 = vmax.f32 %v473_v18, 0.0  ;;  %v711_v13 = vld [vmem:[#allocation2 + $0x18] sm:$0xff]  ;;  %v708_v19 = vld [vmem:[#allocation2] sm:$0xff] }
  0xdb   : > { %v480_v23 = vmax.f32 %v475_v21, 0.0 }
  0xdd   : > { %520 = vmatprep.subr.mxu0 %v480_v23 }
  0xde   : > { %521 = vmatpush1.msra.mxu0 %v479_v24 }
  0xdf   : > { %522 = vmatprep.subr.mxu0 %v478_v25 }
  0xe0   : > { %523 = vmatpush1.msra.mxu0 %v477_v26 }
  0xe1   : > { %920 = vmatmul.mubr.msk.f32.vlgmr.msra.gmra.mxu0 %vm488_vm2, %v481_v27 }
  0xe2   : > { %947 = vmatprep.mubr.msk.f32.mxu0 %vm753_vm7, %v749_v9 }
 0x1a1   : > { %v558_v28 = vpop.f32.mrf.mxu0 }
 0x1a2   : > { %v559_v32 = vadd.f32 %v558_v28, %v486_v29 }
 0x1a3   : > { %v560_v30 = vpop.f32.mrf.mxu0 }
 0x1a4   : > { %v561_v31 = vadd.f32 %v560_v30, %v486_v29  ;;  %v750_v30 = vld [vmem:[%s1177_s7 + $0x8] sm:$0x3] }
 0x1a6   : > { %921 = vmatprep.subr.msk.mxu1 %vm604_vm3, %v561_v31  ;;  %v752_v31 = vld [vmem:[%s1178_s8 + $0x8] sm:$0x3] }
 0x1a7   : > { %922 = vmatpush1.msk.msra.mxu1 %vm604_vm3, %v559_v32 }
 0x1a8   : > { %923 = vmatmul.mubr.msk.f32.vlgmr.msra.gmra.mxu1 %vm591_vm4, %v563_v33  ;;  %v751_v33 = vld [vmem:[%s1178_s8] sm:$0xff] }
 0x1a9   : > { %681 = vmatprep.mubr.f32.mxu1 %v1002_v0 }
 0x1ac   : > { %924 = vmatmul.mubr.msk.f32.gmra.mxu1 %vm591_vm4, %v564_v34 }
 0x1ad   : > { %687 = vmatprep.mubr.f32.mxu1 %v1002_v0 }
 0x1b0   : > { %925 = vmatmul.mubr.msk.f32.gmra.mxu1 %vm591_vm4, %v565_v35 }
 0x1b1   : > { %693 = vmatprep.mubr.f32.mxu1 %v1002_v0 }
 0x1b4   : > { %926 = vmatmul.mubr.msk.f32.gmra.mxu1 %vm591_vm4, %v566_v36 }
 0x268   : > { %v677_v37 = vpop.f32.mrf.mxu1 }
 0x269   : > { %v678_v0 = vadd.f32 %v677_v37, %v574_v49 }
 0x26a   : > { %v679_v39 = vpop.f32.mrf.mxu1 }
 0x26b   : > { %v680_v51 = vadd.f32 %v679_v39, %v574_v49  ;;  %v700_v7 = vmax.f32 %v678_v0, 0.0 }
 0x26c   : > { %v683_v40 = vpop.f32.mrf.mxu1 }
 0x26d   : > { %v684_v54 = vadd.f32 %v683_v40, %v579_v43  ;;  %v701_v61 = vmax.f32 %v680_v51, 0.0 }
 0x26e   : > { %v685_v42 = vpop.f32.mrf.mxu1 }
 0x26f   : > { %v686_v45 = vadd.f32 %v685_v42, %v579_v43  ;;  %v702_v1 = vmax.f32 %v684_v54, 0.0  ;;  %v713_v6 = vsel %vm712_vm6, %v701_v61, 0.0 }
 0x270   : > { %v689_v44 = vpop.f32.mrf.mxu1  ;;  %v714_v8 = vadd.f32 %v713_v6, %v700_v7 }
 0x271   : > { %v690_v46 = vadd.f32 %v689_v44, %v584_v41  ;;  %v703_v52 = vmax.f32 %v686_v45, 0.0 }
 0x272   : > { %v691_v47 = vpop.f32.mrf.mxu1 }
 0x273   : > { %v692_v48 = vadd.f32 %v691_v47, %v584_v41  ;;  %v704_v55 = vmax.f32 %v690_v46, 0.0  ;;  %v717_v63 = vsel %vm712_vm6, %v703_v52, 0.0 }
 0x274   : > { %v695_v50 = vpop.f32.mrf.mxu1  ;;  %v718_v5 = vadd.f32 %v717_v63, %v702_v1 }
 0x275   : > { %v705_v53 = vmax.f32 %v692_v48, 0.0  ;;  %v696_v56 = vadd.f32 %v695_v50, %v589_v38 }
 0x276   : > { %v697_v57 = vpop.f32.mrf.mxu1 }
 0x277   : > { %v698_v58 = vadd.f32 %v697_v57, %v589_v38  ;;  %v721_v59 = vsel %vm712_vm6, %v705_v53, 0.0  ;;  %v706_v2 = vmax.f32 %v696_v56, 0.0 }
 0x278   : > { %v722_v60 = vadd.f32 %v721_v59, %v704_v55 }
 0x279   : > { %v707_v62 = vmax.f32 %v698_v58, 0.0 }
 0x27a   : > { %723 = vadd.xlane.f32.xlu0 %v722_v60 }
 0x27b   : > { %v725_v3 = vsel %vm712_vm6, %v707_v62, 0.0 }
 0x27c   : > { %v726_v4 = vadd.f32 %v725_v3, %v706_v2 }
 0x27e   : > { %727 = vadd.xlane.f32.xlu1 %v726_v4  ;;  %719 = vadd.xlane.f32.xlu0 %v718_v5 }
 0x282   : > { %715 = vadd.xlane.f32.xlu1 %v714_v8 }
 0x303   : > { %v724_v11 = vpop.xlane.xlu0 %723 }
 0x304   : > { %v731_v12 = vadd.f32 %v724_v11, %v710_v10 }
 0x306   : > { %736 = vst.msk [vmem:[#allocation2 + $0x10] sm:$0xff] %vm365_vm5, %v731_v12 }
 0x307   : > { %v728_v15 = vpop.xlane.xlu1 %727  ;;  %v720_v16 = vpop.xlane.xlu0 %719 }
 0x308   : > { %v732_v17 = vadd.f32 %v728_v15, %v711_v13  ;;  %v730_v18 = vadd.f32 %v720_v16, %v709_v14 }
 0x30a   : > { %737 = vst.msk [vmem:[#allocation2 + $0x18] sm:$0xff] %vm365_vm5, %v732_v17  ;;  %735 = vst.msk [vmem:[#allocation2 + $0x8] sm:$0xff] %vm365_vm5, %v730_v18 }
 0x30b   : > { %v716_v20 = vpop.xlane.xlu1 %715 }
 0x30c   : > { %v729_v21 = vadd.f32 %v716_v20, %v708_v19 }
 0x30d   : > { %v743_v23 = vld [vmem:[#allocation2 + $0x10] sm:$0xff] }
 0x30e   : > { %734 = vst.msk [vmem:[#allocation2] sm:$0xff] %vm365_vm5, %v729_v21  ;;  %v747_v26 = vmul.f32 0.0052083335, %v743_v23 }
 0x311   : > { %v744_v22 = vld [vmem:[#allocation2 + $0x18] sm:$0xff]  ;;  %v742_v25 = vld [vmem:[#allocation2 + $0x8] sm:$0xff] }
 0x312   : > { %v748_v24 = vmul.f32 0.0052083335, %v744_v22  ;;  %v746_v28 = vmul.f32 0.0052083335, %v742_v25 }
 0x314   : > { %939 = vmatprep.subr.mxu0 %v748_v24 }
 0x315   : > { %940 = vmatpush3.msra.mxu0 %v748_v24  ;;  %v741_v27 = vld [vmem:[#allocation2] sm:$0xff] }
 0x316   : > { %941 = vmatprep.subr.mxu0 %v747_v26  ;;  %v745_v29 = vmul.f32 0.0052083335, %v741_v27 }
 0x317   : > { %942 = vmatpush3.msra.mxu0 %v747_v26 }
 0x318   : > { %943 = vmatprep.subr.mxu0 %v746_v28 }
 0x319   : > { %944 = vmatpush3.msra.mxu0 %v746_v28 }
 0x31a   : > { %945 = vmatprep.subr.mxu0 %v745_v29 }
 0x31b   : > { %946 = vmatpush3.msra.mxu0 %v745_v29 }
 0x31c   : > { %948 = vmatmul.mubr.msk.f32.vlgmr.msra.gmra.mxu0 %vm753_vm7, %v750_v30 }
 0x3dc   : > { %v949_v32 = vpop.f32.mrf.mxu0 }
 0x3dd   : > { %v832_v34 = vadd.f32 %v949_v32, %v752_v31 }
 0x3de   : > { %v826_v35 = vpop.f32.mrf.mxu0 }
 0x3df   : > { %837 = vst.msk [vmem:[%s360_s21 + $0x8] sm:$0x3] %vm836_vm8, %v832_v34  ;;  %v827_v36 = vadd.f32 %v826_v35, %v751_v33 }
 0x3e1   : > { %835 = vst.msk [vmem:[%s360_s21] sm:$0xff] %vm365_vm5, %v827_v36 }
 0x3e2 PF: > { %s19_s11 = sadd.s32 1, %s1000_s11   ;;  %s1180_s30 = smov %s996_s10 }
 0x3e3   : > { %p16_p5 = scmp.ge.s32.totalorder %s19_s11, 4   ;;  %s1181_s10 = smov %s1183_s12 }
 0x3e5   :  { %18 = sbr.rel (!%p16_p5) target bundleno = 2 (0x2), region = 94 }

</bundles_post_ra>
